<compile_context>
chip_gen: v7x
topology: tpu7x:2x2x1
jax: 0.10.0
libtpu: 0.0.40
codegen_flags: <defaults>
</compile_context>

<pallas_src>
import jax
import jax.numpy as jnp
from jax.experimental import pallas as pl
from jax.experimental.pallas import tpu as pltpu

HIDDEN = 32
LATENT = 16
IN_DIM = 784
LABELS = 10
OUT_PAD = 896  # 784 rounded up to a multiple of 128 -> unmasked output stores

_VMEM = pl.BlockSpec(memory_space=pltpu.MemorySpace.VMEM)


# ------------------------------ Fused kernel ------------------------------- #

def _fused_forward_kernel(x_ref, y_ref, eps_ref,
                          w_enc0_ref, w_hid_ref, w_mean_ref, w_var_ref,
                          w_emb_ref, w_ez_ref, w_dec5_ref,
                          b_hid_ref, b_mv_ref, b_dec5_ref,
                          out_ref, mean_ref, logvar_ref):
    f32 = jnp.float32

    def dense(h, w, b, act):
        y = jnp.dot(h, w, preferred_element_type=f32) + b
        if act == "tanh":
            return jnp.tanh(y)
        if act == "sigmoid":
            return jax.nn.sigmoid(y)
        return y

    def b32(i):  # (1, 32) row out of the packed (11, 32) bias slab
        return b_hid_ref[pl.ds(i, 1), :]

    # ---- Encoder: 5 x (Linear + tanh) --------------------------------------
    h = dense(x_ref[...], w_enc0_ref[...], b32(0), "tanh")
    for i in range(4):                                   # enc1 .. enc4
        h = dense(h, w_hid_ref[i], b32(1 + i), "tanh")
    latent1 = h

    # ---- mean / log_var heads + reparameterization (fused) -----------------
    mean = dense(latent1, w_mean_ref[...], b_mv_ref[pl.ds(0, 1), :], "tanh")
    log_var = dense(latent1, w_var_ref[...], b_mv_ref[pl.ds(1, 1), :], "tanh")
    z = mean + jnp.exp(0.5 * log_var) * eps_ref[...]
    mean_ref[...] = mean.astype(mean_ref.dtype)
    logvar_ref[...] = log_var.astype(logvar_ref.dtype)

    # ---- label embedding + joint embedding ----------------------------------
    # cat([z, ey]) @ W_el  ==  z @ W_el[:L] + ey @ W_el[L:]  -> no concat needed
    ey = dense(y_ref[...], w_emb_ref[...], b32(5), "tanh")
    latent2 = jnp.tanh(
        jnp.dot(z, w_ez_ref[...], preferred_element_type=f32)
        + jnp.dot(ey, w_hid_ref[4], preferred_element_type=f32)
        + b32(6))

    # ---- Decoder: 4 x (Linear + tanh), then Linear + sigmoid (lane-padded) --
    h = latent2
    for i in range(4):                                   # dec1 .. dec4
        h = dense(h, w_hid_ref[5 + i], b32(7 + i), "tanh")
    out = dense(h, w_dec5_ref[...], b_dec5_ref[...], "sigmoid")
    out_ref[...] = out.astype(out_ref.dtype)


# ------------------------------ Forward wrapper ---------------------------- #

def conditional_m1_forward(kparams, x, y, eps):
    """Mirrors ConditionalM1.forward(x, y) -> (out, mean, log_var).

    x: (B, 784), y: (B, 10) one-hot, eps: (B, LATENT) ~ N(0,1) drawn outside
    (equivalent of torch.randn_like in Sampling()).
    """
    B = x.shape[0]
    Bp = max(8, -(-B // 8) * 8)        # pad batch to >= 8 sublanes
    if Bp != B:
        pad = ((0, Bp - B), (0, 0))
        x = jnp.pad(x, pad)
        y = jnp.pad(y, pad)
        eps = jnp.pad(eps, pad)

    out_shapes = (
        jax.ShapeDtypeStruct((Bp, OUT_PAD), x.dtype),
        jax.ShapeDtypeStruct((Bp, LATENT), x.dtype),
        jax.ShapeDtypeStruct((Bp, LATENT), x.dtype),
    )
    out_p, mean_p, logvar_p = pl.pallas_call(
        _fused_forward_kernel,
        out_shape=out_shapes,
        in_specs=[_VMEM] * 13,
        out_specs=(_VMEM, _VMEM, _VMEM),
        compiler_params=pltpu.CompilerParams(vmem_limit_bytes=8 * 1024 * 1024),
    )(x, y.astype(x.dtype), eps,
      kparams["w_enc0"], kparams["w_hid"], kparams["w_mean"], kparams["w_var"],
      kparams["w_emb"], kparams["w_ez"], kparams["w_dec5"],
      kparams["b_hid"], kparams["b_mv"], kparams["b_dec5"])

    out = out_p[:B, :IN_DIM]
    return out, mean_p[:B], logvar_p[:B]


# ----------------------------- Parameter setup ----------------------------- #

def _init_linear(key, din, dout, dtype=jnp.float32):
    kw, kb = jax.random.split(key)
    bound = 1.0 / (din ** 0.5)          # PyTorch nn.Linear default init
    w = jax.random.uniform(kw, (din, dout), dtype, minval=-bound, maxval=bound)
    b = jax.random.uniform(kb, (dout,), dtype, minval=-bound, maxval=bound)
    return w, b


def init_params(key, hidden=HIDDEN, latent=LATENT, dtype=jnp.float32):
    spec = [
        ("enc0", IN_DIM, hidden), ("enc1", hidden, hidden), ("enc2", hidden, hidden),
        ("enc3", hidden, hidden), ("enc4", hidden, hidden),
        ("layer_mean", hidden, latent), ("layer_var", hidden, latent),
        ("embedding", LABELS, hidden), ("embedding_latent", latent + hidden, hidden),
        ("dec1", hidden, hidden), ("dec2", hidden, hidden), ("dec3", hidden, hidden),
        ("dec4", hidden, hidden), ("dec5", hidden, IN_DIM),
        # layer_y, layer_latent2 and the Classifier exist in __init__ but are
        # never used in ConditionalM1.forward, so they are omitted.
    ]
    keys = jax.random.split(key, len(spec))
    return {name: _init_linear(k, din, dout, dtype)
            for k, (name, din, dout) in zip(keys, spec)}


def pack_params(params, latent=LATENT):
    """Repack per-layer (W, b) into the slabs consumed by the fused kernel."""
    w_el, b_el = params["embedding_latent"]
    w_ez, w_ey = w_el[:latent], w_el[latent:]            # split kills the concat
    w_d5, b_d5 = params["dec5"]
    pad = OUT_PAD - IN_DIM
    w_d5p = jnp.pad(w_d5, ((0, 0), (0, pad)))            # lane-dense 784 -> 896
    b_d5p = jnp.pad(b_d5, ((0, pad),)).reshape(1, OUT_PAD)

    hid_names = ["enc1", "enc2", "enc3", "enc4"]
    dec_names = ["dec1", "dec2", "dec3", "dec4"]
    w_hid = jnp.stack([params[n][0] for n in hid_names] + [w_ey]
                      + [params[n][0] for n in dec_names])            # (9,32,32)
    b_hid = jnp.stack([params[n][1] for n in ["enc0"] + hid_names]
                      + [params["embedding"][1], b_el]
                      + [params[n][1] for n in dec_names])            # (11,32)
    b_mv = jnp.stack([params["layer_mean"][1], params["layer_var"][1]])  # (2,16)

    return dict(
        w_enc0=params["enc0"][0], w_hid=w_hid,
        w_mean=params["layer_mean"][0], w_var=params["layer_var"][0],
        w_emb=params["embedding"][0], w_ez=w_ez,
        w_dec5=w_d5p, b_hid=b_hid, b_mv=b_mv, b_dec5=b_d5p,
    )


# ----------------------------- Pure-JAX reference -------------------------- #

def _ref_forward(params, x, y, eps):
    def mm(a, b):
        return jnp.dot(a, b, precision="highest")
    h = x
    for n in ("enc0", "enc1", "enc2", "enc3", "enc4"):
        w, b = params[n]
        h = jnp.tanh(mm(h, w) + b)
    mean = jnp.tanh(mm(h, params["layer_mean"][0]) + params["layer_mean"][1])
    log_var = jnp.tanh(mm(h, params["layer_var"][0]) + params["layer_var"][1])
    z = mean + jnp.exp(0.5 * log_var) * eps
    ey = jnp.tanh(mm(y, params["embedding"][0]) + params["embedding"][1])
    zy = jnp.concatenate([z, ey], axis=1)
    h = jnp.tanh(mm(zy, params["embedding_latent"][0]) + params["embedding_latent"][1])
    for n in ("dec1", "dec2", "dec3", "dec4"):
        w, b = params[n]
        h = jnp.tanh(mm(h, w) + b)
    out = jax.nn.sigmoid(mm(h, params["dec5"][0]) + params["dec5"][1])
    return out, mean, log_var


# ---------------------------------- Main ----------------------------------- #

if __name__ == "__main__":
    BATCH = 8   # >= 8 rows so every vreg sublane / MXU row is occupied

    root = jax.random.PRNGKey(0)
    k_params, k_x, k_y, k_eps = jax.random.split(root, 4)

    params = init_params(k_params)
    kparams = pack_params(params)

    # MNIST-like flattened image in [0,1], one-hot labels, reparam noise.
    x = jax.nn.sigmoid(jax.random.normal(k_x, (BATCH, IN_DIM), jnp.float32))
    labels = jax.random.randint(k_y, (BATCH,), 0, LABELS)
    y = jax.nn.one_hot(labels, LABELS, dtype=jnp.float32)
    eps = jax.random.normal(k_eps, (BATCH, LATENT), jnp.float32)

    fwd = jax.jit(conditional_m1_forward)
    out, mean, log_var = fwd(kparams, x, y, eps)
    jax.block_until_ready((out, mean, log_var))

    # Shape / range / numerical checks against the pure-JAX reference.
    r_out, r_mean, r_lv = _ref_forward(params, x, y, eps)
    assert out.shape == (BATCH, IN_DIM)
    assert mean.shape == (BATCH, LATENT)
    assert log_var.shape == (BATCH, LATENT)
    assert bool(jnp.all(jnp.isfinite(out)))
    assert bool(jnp.all((out >= 0.0) & (out <= 1.0)))
    assert bool(jnp.allclose(out, r_out, atol=5e-3))
    assert bool(jnp.allclose(mean, r_mean, atol=5e-3))
    assert bool(jnp.allclose(log_var, r_lv, atol=5e-3))

    print("KERNEL_OK")
</pallas_src>

<mosaic_0001>
module attributes {stable_mosaic.version = 11 : i64} {
  func.func @_fused_forward_kernel(%arg0: memref<8x784xf32, #tpu.memory_space<vmem>>, %arg1: memref<8x10xf32, #tpu.memory_space<vmem>>, %arg2: memref<8x16xf32, #tpu.memory_space<vmem>>, %arg3: memref<784x32xf32, #tpu.memory_space<vmem>>, %arg4: memref<9x32x32xf32, #tpu.memory_space<vmem>>, %arg5: memref<32x16xf32, #tpu.memory_space<vmem>>, %arg6: memref<32x16xf32, #tpu.memory_space<vmem>>, %arg7: memref<10x32xf32, #tpu.memory_space<vmem>>, %arg8: memref<16x32xf32, #tpu.memory_space<vmem>>, %arg9: memref<32x896xf32, #tpu.memory_space<vmem>>, %arg10: memref<11x32xf32, #tpu.memory_space<vmem>>, %arg11: memref<2x16xf32, #tpu.memory_space<vmem>>, %arg12: memref<1x896xf32, #tpu.memory_space<vmem>>, %arg13: memref<8x896xf32, #tpu.memory_space<vmem>>, %arg14: memref<8x16xf32, #tpu.memory_space<vmem>>, %arg15: memref<8x16xf32, #tpu.memory_space<vmem>>) attributes {dimension_semantics = [], scalar_prefetch = 0 : i64, scratch_operands = 0 : i64, tpu.core_type = #tpu.core_type<tc>} {
    %c0 = arith.constant 0 : index
    %c0_0 = arith.constant 0 : index
    %0 = vector.load %arg0[%c0, %c0_0] : memref<8x784xf32, #tpu.memory_space<vmem>>, vector<8x784xf32>
    %c0_1 = arith.constant 0 : index
    %c0_2 = arith.constant 0 : index
    %1 = vector.load %arg3[%c0_1, %c0_2] : memref<784x32xf32, #tpu.memory_space<vmem>>, vector<784x32xf32>
    %c0_3 = arith.constant 0 : index
    %c0_4 = arith.constant 0 : index
    %2 = vector.load %arg10[%c0_3, %c0_4] : memref<11x32xf32, #tpu.memory_space<vmem>>, vector<1x32xf32>
    %cst = arith.constant dense<0.000000e+00> : vector<8x32xf32>
    %3 = tpu.matmul %0, %1, %cst {dimension_numbers = #tpu.dot_dimension_numbers<[1], [0], [0], [1], [0, 0, 1, 1], [], []>} : vector<8x784xf32>, vector<784x32xf32>, vector<8x32xf32> -> vector<8x32xf32>
    %4 = vector.broadcast %2 : vector<1x32xf32> to vector<8x32xf32>
    %5 = arith.addf %3, %4 : vector<8x32xf32>
    %6 = math.tanh %5 : vector<8x32xf32>
    %c0_5 = arith.constant 0 : index
    %c0_6 = arith.constant 0 : index
    %c0_7 = arith.constant 0 : index
    %7 = vector.load %arg4[%c0_5, %c0_6, %c0_7] : memref<9x32x32xf32, #tpu.memory_space<vmem>>, vector<1x32x32xf32>
    %8 = vector.shape_cast %7 : vector<1x32x32xf32> to vector<32x32xf32>
    %c1 = arith.constant 1 : index
    %c0_8 = arith.constant 0 : index
    %9 = vector.load %arg10[%c1, %c0_8] : memref<11x32xf32, #tpu.memory_space<vmem>>, vector<1x32xf32>
    %cst_9 = arith.constant dense<0.000000e+00> : vector<8x32xf32>
    %10 = tpu.matmul %6, %8, %cst_9 {dimension_numbers = #tpu.dot_dimension_numbers<[1], [0], [0], [1], [0, 0, 1, 1], [], []>} : vector<8x32xf32>, vector<32x32xf32>, vector<8x32xf32> -> vector<8x32xf32>
    %11 = vector.broadcast %9 : vector<1x32xf32> to vector<8x32xf32>
    %12 = arith.addf %10, %11 : vector<8x32xf32>
    %13 = math.tanh %12 : vector<8x32xf32>
    %c1_10 = arith.constant 1 : index
    %c0_11 = arith.constant 0 : index
    %c0_12 = arith.constant 0 : index
    %14 = vector.load %arg4[%c1_10, %c0_11, %c0_12] : memref<9x32x32xf32, #tpu.memory_space<vmem>>, vector<1x32x32xf32>
    %15 = vector.shape_cast %14 : vector<1x32x32xf32> to vector<32x32xf32>
    %c2 = arith.constant 2 : index
    %c0_13 = arith.constant 0 : index
    %16 = vector.load %arg10[%c2, %c0_13] : memref<11x32xf32, #tpu.memory_space<vmem>>, vector<1x32xf32>
    %cst_14 = arith.constant dense<0.000000e+00> : vector<8x32xf32>
    %17 = tpu.matmul %13, %15, %cst_14 {dimension_numbers = #tpu.dot_dimension_numbers<[1], [0], [0], [1], [0, 0, 1, 1], [], []>} : vector<8x32xf32>, vector<32x32xf32>, vector<8x32xf32> -> vector<8x32xf32>
    %18 = vector.broadcast %16 : vector<1x32xf32> to vector<8x32xf32>
    %19 = arith.addf %17, %18 : vector<8x32xf32>
    %20 = math.tanh %19 : vector<8x32xf32>
    %c2_15 = arith.constant 2 : index
    %c0_16 = arith.constant 0 : index
    %c0_17 = arith.constant 0 : index
    %21 = vector.load %arg4[%c2_15, %c0_16, %c0_17] : memref<9x32x32xf32, #tpu.memory_space<vmem>>, vector<1x32x32xf32>
    %22 = vector.shape_cast %21 : vector<1x32x32xf32> to vector<32x32xf32>
    %c3 = arith.constant 3 : index
    %c0_18 = arith.constant 0 : index
    %23 = vector.load %arg10[%c3, %c0_18] : memref<11x32xf32, #tpu.memory_space<vmem>>, vector<1x32xf32>
    %cst_19 = arith.constant dense<0.000000e+00> : vector<8x32xf32>
    %24 = tpu.matmul %20, %22, %cst_19 {dimension_numbers = #tpu.dot_dimension_numbers<[1], [0], [0], [1], [0, 0, 1, 1], [], []>} : vector<8x32xf32>, vector<32x32xf32>, vector<8x32xf32> -> vector<8x32xf32>
    %25 = vector.broadcast %23 : vector<1x32xf32> to vector<8x32xf32>
    %26 = arith.addf %24, %25 : vector<8x32xf32>
    %27 = math.tanh %26 : vector<8x32xf32>
    %c3_20 = arith.constant 3 : index
    %c0_21 = arith.constant 0 : index
    %c0_22 = arith.constant 0 : index
    %28 = vector.load %arg4[%c3_20, %c0_21, %c0_22] : memref<9x32x32xf32, #tpu.memory_space<vmem>>, vector<1x32x32xf32>
    %29 = vector.shape_cast %28 : vector<1x32x32xf32> to vector<32x32xf32>
    %c4 = arith.constant 4 : index
    %c0_23 = arith.constant 0 : index
    %30 = vector.load %arg10[%c4, %c0_23] : memref<11x32xf32, #tpu.memory_space<vmem>>, vector<1x32xf32>
    %cst_24 = arith.constant dense<0.000000e+00> : vector<8x32xf32>
    %31 = tpu.matmul %27, %29, %cst_24 {dimension_numbers = #tpu.dot_dimension_numbers<[1], [0], [0], [1], [0, 0, 1, 1], [], []>} : vector<8x32xf32>, vector<32x32xf32>, vector<8x32xf32> -> vector<8x32xf32>
    %32 = vector.broadcast %30 : vector<1x32xf32> to vector<8x32xf32>
    %33 = arith.addf %31, %32 : vector<8x32xf32>
    %34 = math.tanh %33 : vector<8x32xf32>
    %c0_25 = arith.constant 0 : index
    %c0_26 = arith.constant 0 : index
    %35 = vector.load %arg5[%c0_25, %c0_26] : memref<32x16xf32, #tpu.memory_space<vmem>>, vector<32x16xf32>
    %c0_27 = arith.constant 0 : index
    %c0_28 = arith.constant 0 : index
    %36 = vector.load %arg11[%c0_27, %c0_28] : memref<2x16xf32, #tpu.memory_space<vmem>>, vector<1x16xf32>
    %cst_29 = arith.constant dense<0.000000e+00> : vector<8x16xf32>
    %37 = tpu.matmul %34, %35, %cst_29 {dimension_numbers = #tpu.dot_dimension_numbers<[1], [0], [0], [1], [0, 0, 1, 1], [], []>} : vector<8x32xf32>, vector<32x16xf32>, vector<8x16xf32> -> vector<8x16xf32>
    %38 = vector.broadcast %36 : vector<1x16xf32> to vector<8x16xf32>
    %39 = arith.addf %37, %38 : vector<8x16xf32>
    %40 = math.tanh %39 : vector<8x16xf32>
    %c0_30 = arith.constant 0 : index
    %c0_31 = arith.constant 0 : index
    %41 = vector.load %arg6[%c0_30, %c0_31] : memref<32x16xf32, #tpu.memory_space<vmem>>, vector<32x16xf32>
    %c1_32 = arith.constant 1 : index
    %c0_33 = arith.constant 0 : index
    %42 = vector.load %arg11[%c1_32, %c0_33] : memref<2x16xf32, #tpu.memory_space<vmem>>, vector<1x16xf32>
    %cst_34 = arith.constant dense<0.000000e+00> : vector<8x16xf32>
    %43 = tpu.matmul %34, %41, %cst_34 {dimension_numbers = #tpu.dot_dimension_numbers<[1], [0], [0], [1], [0, 0, 1, 1], [], []>} : vector<8x32xf32>, vector<32x16xf32>, vector<8x16xf32> -> vector<8x16xf32>
    %44 = vector.broadcast %42 : vector<1x16xf32> to vector<8x16xf32>
    %45 = arith.addf %43, %44 : vector<8x16xf32>
    %46 = math.tanh %45 : vector<8x16xf32>
    %cst_35 = arith.constant 5.000000e-01 : f32
    %47 = vector.broadcast %cst_35 : f32 to vector<8x16xf32>
    %48 = arith.mulf %47, %46 : vector<8x16xf32>
    %49 = math.exp %48 : vector<8x16xf32>
    %c0_36 = arith.constant 0 : index
    %c0_37 = arith.constant 0 : index
    %50 = vector.load %arg2[%c0_36, %c0_37] : memref<8x16xf32, #tpu.memory_space<vmem>>, vector<8x16xf32>
    %51 = arith.mulf %49, %50 : vector<8x16xf32>
    %52 = arith.addf %40, %51 : vector<8x16xf32>
    %c0_38 = arith.constant 0 : index
    %c0_39 = arith.constant 0 : index
    %53 = vector.load %arg14[%c0_38, %c0_39] : memref<8x16xf32, #tpu.memory_space<vmem>>, vector<8x16xf32>
    tpu.vector_store %arg14[%c0_38, %c0_39], %40 {strides = array<i32>} : memref<8x16xf32, #tpu.memory_space<vmem>>, vector<8x16xf32>,
    %c0_40 = arith.constant 0 : index
    %c0_41 = arith.constant 0 : index
    %54 = vector.load %arg15[%c0_40, %c0_41] : memref<8x16xf32, #tpu.memory_space<vmem>>, vector<8x16xf32>
    tpu.vector_store %arg15[%c0_40, %c0_41], %46 {strides = array<i32>} : memref<8x16xf32, #tpu.memory_space<vmem>>, vector<8x16xf32>,
    %c0_42 = arith.constant 0 : index
    %c0_43 = arith.constant 0 : index
    %55 = vector.load %arg1[%c0_42, %c0_43] : memref<8x10xf32, #tpu.memory_space<vmem>>, vector<8x10xf32>
    %c0_44 = arith.constant 0 : index
    %c0_45 = arith.constant 0 : index
    %56 = vector.load %arg7[%c0_44, %c0_45] : memref<10x32xf32, #tpu.memory_space<vmem>>, vector<10x32xf32>
    %c5 = arith.constant 5 : index
    %c0_46 = arith.constant 0 : index
    %57 = vector.load %arg10[%c5, %c0_46] : memref<11x32xf32, #tpu.memory_space<vmem>>, vector<1x32xf32>
    %cst_47 = arith.constant dense<0.000000e+00> : vector<8x32xf32>
    %58 = tpu.matmul %55, %56, %cst_47 {dimension_numbers = #tpu.dot_dimension_numbers<[1], [0], [0], [1], [0, 0, 1, 1], [], []>} : vector<8x10xf32>, vector<10x32xf32>, vector<8x32xf32> -> vector<8x32xf32>
    %59 = vector.broadcast %57 : vector<1x32xf32> to vector<8x32xf32>
    %60 = arith.addf %58, %59 : vector<8x32xf32>
    %61 = math.tanh %60 : vector<8x32xf32>
    %c0_48 = arith.constant 0 : index
    %c0_49 = arith.constant 0 : index
    %62 = vector.load %arg8[%c0_48, %c0_49] : memref<16x32xf32, #tpu.memory_space<vmem>>, vector<16x32xf32>
    %cst_50 = arith.constant dense<0.000000e+00> : vector<8x32xf32>
    %63 = tpu.matmul %52, %62, %cst_50 {dimension_numbers = #tpu.dot_dimension_numbers<[1], [0], [0], [1], [0, 0, 1, 1], [], []>} : vector<8x16xf32>, vector<16x32xf32>, vector<8x32xf32> -> vector<8x32xf32>
    %c4_51 = arith.constant 4 : index
    %c0_52 = arith.constant 0 : index
    %c0_53 = arith.constant 0 : index
    %64 = vector.load %arg4[%c4_51, %c0_52, %c0_53] : memref<9x32x32xf32, #tpu.memory_space<vmem>>, vector<1x32x32xf32>
    %65 = vector.shape_cast %64 : vector<1x32x32xf32> to vector<32x32xf32>
    %cst_54 = arith.constant dense<0.000000e+00> : vector<8x32xf32>
    %66 = tpu.matmul %61, %65, %cst_54 {dimension_numbers = #tpu.dot_dimension_numbers<[1], [0], [0], [1], [0, 0, 1, 1], [], []>} : vector<8x32xf32>, vector<32x32xf32>, vector<8x32xf32> -> vector<8x32xf32>
    %67 = arith.addf %63, %66 : vector<8x32xf32>
    %c6 = arith.constant 6 : index
    %c0_55 = arith.constant 0 : index
    %68 = vector.load %arg10[%c6, %c0_55] : memref<11x32xf32, #tpu.memory_space<vmem>>, vector<1x32xf32>
    %69 = vector.broadcast %68 : vector<1x32xf32> to vector<8x32xf32>
    %70 = arith.addf %67, %69 : vector<8x32xf32>
    %71 = math.tanh %70 : vector<8x32xf32>
    %c5_56 = arith.constant 5 : index
    %c0_57 = arith.constant 0 : index
    %c0_58 = arith.constant 0 : index
    %72 = vector.load %arg4[%c5_56, %c0_57, %c0_58] : memref<9x32x32xf32, #tpu.memory_space<vmem>>, vector<1x32x32xf32>
    %73 = vector.shape_cast %72 : vector<1x32x32xf32> to vector<32x32xf32>
    %c7 = arith.constant 7 : index
    %c0_59 = arith.constant 0 : index
    %74 = vector.load %arg10[%c7, %c0_59] : memref<11x32xf32, #tpu.memory_space<vmem>>, vector<1x32xf32>
    %cst_60 = arith.constant dense<0.000000e+00> : vector<8x32xf32>
    %75 = tpu.matmul %71, %73, %cst_60 {dimension_numbers = #tpu.dot_dimension_numbers<[1], [0], [0], [1], [0, 0, 1, 1], [], []>} : vector<8x32xf32>, vector<32x32xf32>, vector<8x32xf32> -> vector<8x32xf32>
    %76 = vector.broadcast %74 : vector<1x32xf32> to vector<8x32xf32>
    %77 = arith.addf %75, %76 : vector<8x32xf32>
    %78 = math.tanh %77 : vector<8x32xf32>
    %c6_61 = arith.constant 6 : index
    %c0_62 = arith.constant 0 : index
    %c0_63 = arith.constant 0 : index
    %79 = vector.load %arg4[%c6_61, %c0_62, %c0_63] : memref<9x32x32xf32, #tpu.memory_space<vmem>>, vector<1x32x32xf32>
    %80 = vector.shape_cast %79 : vector<1x32x32xf32> to vector<32x32xf32>
    %c8 = arith.constant 8 : index
    %c0_64 = arith.constant 0 : index
    %81 = vector.load %arg10[%c8, %c0_64] : memref<11x32xf32, #tpu.memory_space<vmem>>, vector<1x32xf32>
    %cst_65 = arith.constant dense<0.000000e+00> : vector<8x32xf32>
    %82 = tpu.matmul %78, %80, %cst_65 {dimension_numbers = #tpu.dot_dimension_numbers<[1], [0], [0], [1], [0, 0, 1, 1], [], []>} : vector<8x32xf32>, vector<32x32xf32>, vector<8x32xf32> -> vector<8x32xf32>
    %83 = vector.broadcast %81 : vector<1x32xf32> to vector<8x32xf32>
    %84 = arith.addf %82, %83 : vector<8x32xf32>
    %85 = math.tanh %84 : vector<8x32xf32>
    %c7_66 = arith.constant 7 : index
    %c0_67 = arith.constant 0 : index
    %c0_68 = arith.constant 0 : index
    %86 = vector.load %arg4[%c7_66, %c0_67, %c0_68] : memref<9x32x32xf32, #tpu.memory_space<vmem>>, vector<1x32x32xf32>
    %87 = vector.shape_cast %86 : vector<1x32x32xf32> to vector<32x32xf32>
    %c9 = arith.constant 9 : index
    %c0_69 = arith.constant 0 : index
    %88 = vector.load %arg10[%c9, %c0_69] : memref<11x32xf32, #tpu.memory_space<vmem>>, vector<1x32xf32>
    %cst_70 = arith.constant dense<0.000000e+00> : vector<8x32xf32>
    %89 = tpu.matmul %85, %87, %cst_70 {dimension_numbers = #tpu.dot_dimension_numbers<[1], [0], [0], [1], [0, 0, 1, 1], [], []>} : vector<8x32xf32>, vector<32x32xf32>, vector<8x32xf32> -> vector<8x32xf32>
    %90 = vector.broadcast %88 : vector<1x32xf32> to vector<8x32xf32>
    %91 = arith.addf %89, %90 : vector<8x32xf32>
    %92 = math.tanh %91 : vector<8x32xf32>
    %c8_71 = arith.constant 8 : index
    %c0_72 = arith.constant 0 : index
    %c0_73 = arith.constant 0 : index
    %93 = vector.load %arg4[%c8_71, %c0_72, %c0_73] : memref<9x32x32xf32, #tpu.memory_space<vmem>>, vector<1x32x32xf32>
    %94 = vector.shape_cast %93 : vector<1x32x32xf32> to vector<32x32xf32>
    %c10 = arith.constant 10 : index
    %c0_74 = arith.constant 0 : index
    %95 = vector.load %arg10[%c10, %c0_74] : memref<11x32xf32, #tpu.memory_space<vmem>>, vector<1x32xf32>
    %cst_75 = arith.constant dense<0.000000e+00> : vector<8x32xf32>
    %96 = tpu.matmul %92, %94, %cst_75 {dimension_numbers = #tpu.dot_dimension_numbers<[1], [0], [0], [1], [0, 0, 1, 1], [], []>} : vector<8x32xf32>, vector<32x32xf32>, vector<8x32xf32> -> vector<8x32xf32>
    %97 = vector.broadcast %95 : vector<1x32xf32> to vector<8x32xf32>
    %98 = arith.addf %96, %97 : vector<8x32xf32>
    %99 = math.tanh %98 : vector<8x32xf32>
    %c0_76 = arith.constant 0 : index
    %c0_77 = arith.constant 0 : index
    %100 = vector.load %arg9[%c0_76, %c0_77] : memref<32x896xf32, #tpu.memory_space<vmem>>, vector<32x896xf32>
    %c0_78 = arith.constant 0 : index
    %c0_79 = arith.constant 0 : index
    %101 = vector.load %arg12[%c0_78, %c0_79] : memref<1x896xf32, #tpu.memory_space<vmem>>, vector<1x896xf32>
    %cst_80 = arith.constant dense<0.000000e+00> : vector<8x896xf32>
    %102 = tpu.matmul %99, %100, %cst_80 {dimension_numbers = #tpu.dot_dimension_numbers<[1], [0], [0], [1], [0, 0, 1, 1], [], []>} : vector<8x32xf32>, vector<32x896xf32>, vector<8x896xf32> -> vector<8x896xf32>
    %103 = vector.broadcast %101 : vector<1x896xf32> to vector<8x896xf32>
    %104 = arith.addf %102, %103 : vector<8x896xf32>
    %105 = arith.negf %104 : vector<8x896xf32>
    %106 = math.exp %105 : vector<8x896xf32>
    %cst_81 = arith.constant 1.000000e+00 : f32
    %107 = vector.broadcast %cst_81 : f32 to vector<8x896xf32>
    %108 = arith.addf %107, %106 : vector<8x896xf32>
    %109 = arith.divf %107, %108 : vector<8x896xf32>
    %c0_82 = arith.constant 0 : index
    %c0_83 = arith.constant 0 : index
    %110 = vector.load %arg13[%c0_82, %c0_83] : memref<8x896xf32, #tpu.memory_space<vmem>>, vector<8x896xf32>
    tpu.vector_store %arg13[%c0_82, %c0_83], %109 {strides = array<i32>} : memref<8x896xf32, #tpu.memory_space<vmem>>, vector<8x896xf32>,
    return
  }
}

</mosaic_0001>

<bundles_post_ra>
// kernel: conditional_m1_forward.1
= control target key start
LH: loop header
LB: loop body
LE: loop exit
PB: predicated region body
PF: predicated region fallthrough
CT: control target
= control target key end

     0   :  { %21 = vsyncpa [#allocation3], 0  ;;  %s3501_s0 = inlined_call_operand.vmem [shape: f32[8,784], index: 0, kind: input, shape index: {}]   ;;  %s3502_s1 = inlined_call_operand.vmem [shape: f32[8,10], index: 1, kind: input, shape index: {}]   ;;  %s3503_s2 = inlined_call_operand.vmem [shape: f32[8,16], index: 2, kind: input, shape index: {}]   ;;  %s3504_s3 = inlined_call_operand.vmem [shape: f32[784,32], index: 3, kind: input, shape index: {}]   ;;  %s3505_s4 = inlined_call_operand.vmem [shape: f32[9,32,32], index: 4, kind: input, shape index: {}]   ;;  %s3506_s5 = inlined_call_operand.vmem [shape: f32[32,16], index: 5, kind: input, shape index: {}]   ;;  %s3507_s6 = inlined_call_operand.vmem [shape: f32[32,16], index: 6, kind: input, shape index: {}]   ;;  %s3508_s7 = inlined_call_operand.vmem [shape: f32[10,32], index: 7, kind: input, shape index: {}]   ;;  %s3509_s8 = inlined_call_operand.vmem [shape: f32[16,32], index: 8, kind: input, shape index: {}]   ;;  %s3510_s9 = inlined_call_operand.vmem [shape: f32[32,896], index: 9, kind: input, shape index: {}]   ;;  %s3511_s10 = inlined_call_operand.vmem [shape: f32[11,32], index: 10, kind: input, shape index: {}]   ;;  %s3512_s11 = inlined_call_operand.vmem [shape: f32[2,16], index: 11, kind: input, shape index: {}]   ;;  %s3513_s12 = inlined_call_operand.vmem [shape: f32[1,896], index: 12, kind: input, shape index: {}]   ;;  %s3514_s13 = inlined_call_operand.hbm [shape: f32[8,896], index: 13, kind: output, shape index: {0}]   ;;  %s3515_s14 = inlined_call_operand.hbm [shape: f32[8,16], index: 14, kind: output, shape index: {1}]   ;;  %s3516_s15 = inlined_call_operand.hbm [shape: f32[8,16], index: 15, kind: output, shape index: {2}]  }
   0x1   :  { %v72_v0 = vld [vmem:[%s3504_s3 + $0x80] sm:$0xff]  ;;  %v73_v1 = vld [vmem:[%s3504_s3 + $0x88] sm:$0xff]  ;;  %v74_v11 = vld [vmem:[%s3504_s3 + $0x90] sm:$0xff] }
   0x2   :  { %v56_v2 = vld [vmem:[%s3504_s3] sm:$0xff]  ;;  %v2373_v3 = vpack.c.bf16 %v73_v1, %v72_v0  ;;  %v57_v4 = vld [vmem:[%s3504_s3 + $0x8] sm:$0xff]  ;;  %v75_v13 = vld [vmem:[%s3504_s3 + $0x98] sm:$0xff] }
   0x3   :  { %v104_v5 = vld [vmem:[%s3504_s3 + $0x180] sm:$0xff]  ;;  %v105_v6 = vld [vmem:[%s3504_s3 + $0x188] sm:$0xff]  ;;  %v2375_v7 = vpack.c.bf16 %v57_v4, %v56_v2  ;;  %v58_v14 = vld [vmem:[%s3504_s3 + $0x10] sm:$0xff]  ;;  %v2377_v16 = vpack.c.bf16 %v75_v13, %v74_v11 }
   0x4   :  { %v2405_v8 = vpack.c.bf16 %v105_v6, %v104_v5  ;;  %v88_v9 = vld [vmem:[%s3504_s3 + $0x100] sm:$0xff]  ;;  %v89_v10 = vld [vmem:[%s3504_s3 + $0x108] sm:$0xff]  ;;  %2374 = vmatprep.subr.bf16.mxu0 %v2373_v3  ;;  %v59_v15 = vld [vmem:[%s3504_s3 + $0x18] sm:$0xff] }
   0x5   :  { %v2407_v12 = vpack.c.bf16 %v89_v10, %v88_v9  ;;  %2376 = vmatpush3.bf16.msra.mxu0 %v2375_v7  ;;  %v2379_v17 = vpack.c.bf16 %v59_v15, %v58_v14  ;;  %v106_v18 = vld [vmem:[%s3504_s3 + $0x190] sm:$0xff]  ;;  %v107_v19 = vld [vmem:[%s3504_s3 + $0x198] sm:$0xff]  ;;  %v76_v23 = vld [vmem:[%s3504_s3 + $0xa0] sm:$0xff] }
   0x6   :  { %2406 = vmatprep.subr.bf16.mxu1 %v2405_v8  ;;  %v90_v20 = vld [vmem:[%s3504_s3 + $0x110] sm:$0xff]  ;;  %v2409_v21 = vpack.c.bf16 %v107_v19, %v106_v18  ;;  %v91_v22 = vld [vmem:[%s3504_s3 + $0x118] sm:$0xff]  ;;  %v77_v24 = vld [vmem:[%s3504_s3 + $0xa8] sm:$0xff]  ;;  %2378 = vmatprep.subr.bf16.mxu0 %v2377_v16 }
   0x7   :  { %2408 = vmatpush3.bf16.msra.mxu1 %v2407_v12  ;;  %v2411_v25 = vpack.c.bf16 %v91_v22, %v90_v20  ;;  %v2381_v26 = vpack.c.bf16 %v77_v24, %v76_v23  ;;  %v60_v27 = vld [vmem:[%s3504_s3 + $0x20] sm:$0xff]  ;;  %v61_v28 = vld [vmem:[%s3504_s3 + $0x28] sm:$0xff]  ;;  %v78_v35 = vld [vmem:[%s3504_s3 + $0xb0] sm:$0xff] }
   0x8   :  { %v108_v29 = vld [vmem:[%s3504_s3 + $0x1a0] sm:$0xff]  ;;  %2410 = vmatprep.subr.bf16.mxu1 %v2409_v21  ;;  %v109_v30 = vld [vmem:[%s3504_s3 + $0x1a8] sm:$0xff]  ;;  %v2383_v33 = vpack.c.bf16 %v61_v28, %v60_v27  ;;  %v79_v36 = vld [vmem:[%s3504_s3 + $0xb8] sm:$0xff] }
   0x9   :  { %v92_v31 = vld [vmem:[%s3504_s3 + $0x120] sm:$0xff]  ;;  %v93_v32 = vld [vmem:[%s3504_s3 + $0x128] sm:$0xff]  ;;  %2380 = vmatpush3.bf16.msra.mxu0 %v2379_v17  ;;  %v2413_v34 = vpack.c.bf16 %v109_v30, %v108_v29  ;;  %v62_v37 = vld [vmem:[%s3504_s3 + $0x30] sm:$0xff]  ;;  %v2385_v39 = vpack.c.bf16 %v79_v36, %v78_v35 }
   0xa   :  { %2382 = vmatprep.subr.bf16.mxu0 %v2381_v26  ;;  %v2415_v38 = vpack.c.bf16 %v93_v32, %v92_v31  ;;  %v63_v40 = vld [vmem:[%s3504_s3 + $0x38] sm:$0xff]  ;;  %v110_v41 = vld [vmem:[%s3504_s3 + $0x1b0] sm:$0xff]  ;;  %v80_v46 = vld [vmem:[%s3504_s3 + $0xc0] sm:$0xff] }
   0xb   :  { %2412 = vmatpush3.bf16.msra.mxu1 %v2411_v25  ;;  %v111_v42 = vld [vmem:[%s3504_s3 + $0x1b8] sm:$0xff]  ;;  %v94_v44 = vld [vmem:[%s3504_s3 + $0x130] sm:$0xff]  ;;  %v81_v47 = vld [vmem:[%s3504_s3 + $0xc8] sm:$0xff]  ;;  %v2387_v48 = vpack.c.bf16 %v63_v40, %v62_v37 }
   0xc   :  { %2414 = vmatprep.subr.bf16.mxu1 %v2413_v34  ;;  %v2417_v43 = vpack.c.bf16 %v111_v42, %v110_v41  ;;  %v95_v45 = vld [vmem:[%s3504_s3 + $0x138] sm:$0xff]  ;;  %v112_v49 = vld [vmem:[%s3504_s3 + $0x1c0] sm:$0xff]  ;;  %v113_v50 = vld [vmem:[%s3504_s3 + $0x1c8] sm:$0xff]  ;;  %v2389_v52 = vpack.c.bf16 %v81_v47, %v80_v46 }
   0xd   :  { %2384 = vmatpush3.bf16.msra.mxu0 %v2383_v33  ;;  %v2419_v51 = vpack.c.bf16 %v95_v45, %v94_v44  ;;  %v64_v53 = vld [vmem:[%s3504_s3 + $0x40] sm:$0xff]  ;;  %v65_v54 = vld [vmem:[%s3504_s3 + $0x48] sm:$0xff]  ;;  %v2421_v56 = vpack.c.bf16 %v113_v50, %v112_v49  ;;  %v82_v58 = vld [vmem:[%s3504_s3 + $0xd0] sm:$0xff]  ;;  %v2708_v50 = vmov 0.0|0.0  }
   0xe   :  { %2386 = vmatprep.subr.bf16.mxu0 %v2385_v39  ;;  %v96_v55 = vld [vmem:[%s3504_s3 + $0x140] sm:$0xff]  ;;  %v97_v57 = vld [vmem:[%s3504_s3 + $0x148] sm:$0xff]  ;;  %v83_v59 = vld [vmem:[%s3504_s3 + $0xd8] sm:$0xff]  ;;  %v2391_v62 = vpack.c.bf16 %v65_v54, %v64_v53 }
   0xf   :  { %2416 = vmatpush3.bf16.msra.mxu1 %v2415_v38  ;;  %v114_v60 = vld [vmem:[%s3504_s3 + $0x1d0] sm:$0xff]  ;;  %v115_v61 = vld [vmem:[%s3504_s3 + $0x1d8] sm:$0xff]  ;;  %v2423_v63 = vpack.c.bf16 %v97_v57, %v96_v55  ;;  %v2393_v0 = vpack.c.bf16 %v83_v59, %v82_v58  ;;  %v84_v6 = vld [vmem:[%s3504_s3 + $0xe0] sm:$0xff] }
  0x10   :  { %2418 = vmatprep.subr.bf16.mxu1 %v2417_v43  ;;  %v66_v1 = vld [vmem:[%s3504_s3 + $0x50] sm:$0xff]  ;;  %v67_v2 = vld [vmem:[%s3504_s3 + $0x58] sm:$0xff]  ;;  %v2425_v4 = vpack.c.bf16 %v115_v61, %v114_v60  ;;  %v85_v7 = vld [vmem:[%s3504_s3 + $0xe8] sm:$0xff] }
  0x11   :  { %2388 = vmatpush3.bf16.msra.mxu0 %v2387_v48  ;;  %v98_v3 = vld [vmem:[%s3504_s3 + $0x150] sm:$0xff]  ;;  %v99_v5 = vld [vmem:[%s3504_s3 + $0x158] sm:$0xff]  ;;  %v116_v8 = vld [vmem:[%s3504_s3 + $0x1e0] sm:$0xff]  ;;  %v2395_v10 = vpack.c.bf16 %v67_v2, %v66_v1  ;;  %v2397_v14 = vpack.c.bf16 %v85_v7, %v84_v6 }
  0x12   :  { %2390 = vmatprep.subr.bf16.mxu0 %v2389_v52  ;;  %v117_v9 = vld [vmem:[%s3504_s3 + $0x1e8] sm:$0xff]  ;;  %v68_v11 = vld [vmem:[%s3504_s3 + $0x60] sm:$0xff]  ;;  %v2427_v13 = vpack.c.bf16 %v99_v5, %v98_v3  ;;  %v86_v19 = vld [vmem:[%s3504_s3 + $0xf0] sm:$0xff] }
  0x13   :  { %2420 = vmatpush3.bf16.msra.mxu1 %v2419_v51  ;;  %v50_v12 = vld [vmem:[%s3501_s0 + $0x8] sm:$0xff]  ;;  %v100_v16 = vld [vmem:[%s3504_s3 + $0x160] sm:$0xff]  ;;  %v2429_v18 = vpack.c.bf16 %v117_v9, %v116_v8  ;;  %v87_v20 = vld [vmem:[%s3504_s3 + $0xf8] sm:$0xff] }
  0x14   :  { %2422 = vmatprep.subr.bf16.mxu1 %v2421_v56  ;;  %v69_v15 = vld [vmem:[%s3504_s3 + $0x68] sm:$0xff]  ;;  %227 = vmatprep.mubr.f32.mxu0 %v50_v12  ;;  %v52_v21 = vld [vmem:[%s3501_s0 + $0x18] sm:$0xff]  ;;  %v118_v22 = vld [vmem:[%s3504_s3 + $0x1f0] sm:$0xff]  ;;  %v2401_v26 = vpack.c.bf16 %v87_v20, %v86_v19 }
  0x15   :  { %2392 = vmatpush3.bf16.msra.mxu0 %v2391_v62  ;;  %v101_v17 = vld [vmem:[%s3504_s3 + $0x168] sm:$0xff]  ;;  %v119_v23 = vld [vmem:[%s3504_s3 + $0x1f8] sm:$0xff]  ;;  %297 = vmatprep.mubr.f32.mxu1 %v52_v21  ;;  %v2399_v24 = vpack.c.bf16 %v69_v15, %v68_v11  ;;  %v70_v27 = vld [vmem:[%s3504_s3 + $0x70] sm:$0xff] }
  0x16   :  { %2394 = vmatprep.subr.bf16.mxu0 %v2393_v0  ;;  %v2431_v25 = vpack.c.bf16 %v101_v17, %v100_v16  ;;  %v71_v28 = vld [vmem:[%s3504_s3 + $0x78] sm:$0xff]  ;;  %v102_v29 = vld [vmem:[%s3504_s3 + $0x170] sm:$0xff]  ;;  %v2433_v30 = vpack.c.bf16 %v119_v23, %v118_v22  ;;  %v136_v32 = vld [vmem:[%s3504_s3 + $0x280] sm:$0xff] }
  0x17   :  { %2424 = vmatpush3.bf16.msra.mxu1 %v2423_v63  ;;  %v103_v31 = vld [vmem:[%s3504_s3 + $0x178] sm:$0xff]  ;;  %v137_v33 = vld [vmem:[%s3504_s3 + $0x288] sm:$0xff]  ;;  %v2403_v34 = vpack.c.bf16 %v71_v28, %v70_v27  ;;  %v120_v37 = vld [vmem:[%s3504_s3 + $0x200] sm:$0xff] }
  0x18   :  { %2426 = vmatprep.subr.bf16.mxu1 %v2425_v4  ;;  %v2435_v35 = vpack.c.bf16 %v103_v31, %v102_v29  ;;  %v2437_v36 = vpack.c.bf16 %v137_v33, %v136_v32  ;;  %v121_v38 = vld [vmem:[%s3504_s3 + $0x208] sm:$0xff]  ;;  %v138_v39 = vld [vmem:[%s3504_s3 + $0x290] sm:$0xff]  ;;  %v139_v40 = vld [vmem:[%s3504_s3 + $0x298] sm:$0xff] }
  0x19   :  { %2396 = vmatpush3.bf16.msra.mxu0 %v2395_v10  ;;  %v49_v41 = vld [vmem:[%s3501_s0] sm:$0xff]  ;;  %v2439_v42 = vpack.c.bf16 %v121_v38, %v120_v37  ;;  %v51_v43 = vld [vmem:[%s3501_s0 + $0x10] sm:$0xff]  ;;  %v2441_v45 = vpack.c.bf16 %v139_v40, %v138_v39  ;;  %v123_v46 = vld [vmem:[%s3504_s3 + $0x218] sm:$0xff] }
  0x1a   :  { %2398 = vmatprep.subr.bf16.mxu0 %v2397_v14  ;;  %v122_v44 = vld [vmem:[%s3504_s3 + $0x210] sm:$0xff]  ;;  %v140_v47 = vld [vmem:[%s3504_s3 + $0x2a0] sm:$0xff]  ;;  %v141_v48 = vld [vmem:[%s3504_s3 + $0x2a8] sm:$0xff] }
  0x1b   :  { %2428 = vmatpush3.bf16.msra.mxu1 %v2427_v13  ;;  %v54_v49 = vld [vmem:[%s3501_s0 + $0x28] sm:$0xff]  ;;  %v152_v51 = vld [vmem:[%s3504_s3 + $0x300] sm:$0xff] }
  0x1c   :  { %2430 = vmatprep.subr.bf16.mxu1 %v2429_v18  ;;  %v153_v52 = vld [vmem:[%s3504_s3 + $0x308] sm:$0xff] }
  0x1d   :  { %2400 = vmatpush3.bf16.msra.mxu0 %v2399_v24  ;;  %v2470_v53 = vpack.c.bf16 %v153_v52, %v152_v51 }
  0x1e   :  { %2402 = vmatprep.subr.bf16.mxu0 %v2401_v26 }
  0x1f   :  { %2432 = vmatpush3.bf16.msra.mxu1 %v2431_v25 }
  0x20   :  { %2434 = vmatprep.subr.bf16.mxu1 %v2433_v30 }
  0x21   :  { %2404 = vmatpush3.bf16.msra.mxu0 %v2403_v34 }
  0x22   :  { %2438 = vmatprep.subr.bf16.mxu0 %v2437_v36 }
  0x23   :  { %2436 = vmatpush3.bf16.msra.mxu1 %v2435_v35 }
  0x24   :  { %2469 = vmatprep.subr.bf16.mxu1 %v2708_v50  ;;  %228 = vmatmul.mubr.f32.vlgmr.msra.gmra.mrb[0].mxu0 %v49_v41 }
  0x25   :  { %22 = vsyncpa [#allocation5], 0  ;;  %2440 = vmatpush3.bf16.msra.mxu0 %v2439_v42  ;;  %v2443_v54 = vpack.c.bf16 %v123_v46, %v122_v44  ;;  %v2445_v55 = vpack.c.bf16 %v141_v48, %v140_v47  ;;  %v124_v56 = vld [vmem:[%s3504_s3 + $0x220] sm:$0xff]  ;;  %v125_v57 = vld [vmem:[%s3504_s3 + $0x228] sm:$0xff]  ;;  %367 = vmatprep.mubr.f32.mxu0 %v54_v49  ;;  %vm2709_vm0 = vmmov 0   ;;  %v2710_v60 = vmov 0.0  }
  0x26   :  { %298 = vmatmul.mubr.f32.vlgmr.msra.gmra.mrb[0].mxu1 %v51_v43  ;;  %2442 = vmatprep.subr.bf16.mxu0 %v2441_v45  ;;  %v142_v58 = vld [vmem:[%s3504_s3 + $0x2b0] sm:$0xff]  ;;  %v143_v59 = vld [vmem:[%s3504_s3 + $0x2b8] sm:$0xff]  ;;  %vm159_vm1 = vcmask 130048   ;;  %v2447_v62 = vpack.c.bf16 %v125_v57, %v124_v56  ;;  %v144_v2 = vld [vmem:[%s3504_s3 + $0x2c0] sm:$0xff]  ;;  %vm453_vm2 = vcmask 261120   ;;  %vm963_vm3 = vcmask 1041408  }
  0x27   :  { %2471 = vmatpush3.bf16.msra.mxu1 %v2470_v53  ;;  %2224 = vmatprep.mubr.msk.f32.mxu1 %vm2709_vm0, %v2710_v60  ;;  %v55_v61 = vld [vmem:[%s3501_s0 + $0x30] sm:$0xff]  ;;  %v2449_v63 = vpack.c.bf16 %v143_v59, %v142_v58  ;;  %v127_v1 = vld [vmem:[%s3504_s3 + $0x238] sm:$0xff]  ;;  %v145_v3 = vld [vmem:[%s3504_s3 + $0x2c8] sm:$0xff]  ;;  %vm2711_vm4 = vmmov 1   ;;  %vm959_vm6 = vcmask 80896  }
  0x28   :  { %2472 = vmatprep.subr.bf16.mxu1 %v2708_v50  ;;  %v126_v0 = vld [vmem:[%s3504_s3 + $0x230] sm:$0xff]  ;;  %v2453_v5 = vpack.c.bf16 %v145_v3, %v144_v2  ;;  %v128_v6 = vld [vmem:[%s3504_s3 + $0x240] sm:$0xff]  ;;  %v129_v7 = vld [vmem:[%s3504_s3 + $0x248] sm:$0xff] }
  0x29   :  { %2444 = vmatpush3.bf16.msra.mxu0 %v2443_v54  ;;  %v2451_v4 = vpack.c.bf16 %v127_v1, %v126_v0  ;;  %v146_v8 = vld [vmem:[%s3504_s3 + $0x2d0] sm:$0xff]  ;;  %v147_v9 = vld [vmem:[%s3504_s3 + $0x2d8] sm:$0xff]  ;;  %v2455_v10 = vpack.c.bf16 %v129_v7, %v128_v6  ;;  %v148_v14 = vld [vmem:[%s3504_s3 + $0x2e0] sm:$0xff] }
  0x2a   :  { %2446 = vmatprep.subr.bf16.mxu0 %v2445_v55  ;;  %2225 = vmatmul.mubr.msk.f32.vlgmr.msra.gmra.mrb[2].mxu1 %vm159_vm1, %v55_v61  ;;  %v2457_v11 = vpack.c.bf16 %v147_v9, %v146_v8  ;;  %v130_v12 = vld [vmem:[%s3504_s3 + $0x250] sm:$0xff]  ;;  %v131_v13 = vld [vmem:[%s3504_s3 + $0x258] sm:$0xff]  ;;  %v149_v15 = vld [vmem:[%s3504_s3 + $0x2e8] sm:$0xff] }
  0x2b   :  { %2235 = vmatprep.mubr.msk.f32.mxu1 %vm2709_vm0, %v2710_v60  ;;  %v2459_v16 = vpack.c.bf16 %v131_v13, %v130_v12  ;;  %v2461_v17 = vpack.c.bf16 %v149_v15, %v148_v14  ;;  %v132_v18 = vld [vmem:[%s3504_s3 + $0x260] sm:$0xff]  ;;  %v133_v19 = vld [vmem:[%s3504_s3 + $0x268] sm:$0xff]  ;;  %v150_v20 = vld [vmem:[%s3504_s3 + $0x2f0] sm:$0xff] }
  0x2c   :  { %v151_v21 = vld [vmem:[%s3504_s3 + $0x2f8] sm:$0xff]  ;;  %v2463_v22 = vpack.c.bf16 %v133_v19, %v132_v18  ;;  %v134_v24 = vld [vmem:[%s3504_s3 + $0x270] sm:$0xff]  ;;  %v53_v27 = vld [vmem:[%s3501_s0 + $0x20] sm:$0xff] }
  0x2d   :  { %2448 = vmatpush3.bf16.msra.mxu0 %v2447_v62  ;;  %v2465_v23 = vpack.c.bf16 %v151_v21, %v150_v20  ;;  %v135_v25 = vld [vmem:[%s3504_s3 + $0x278] sm:$0xff]  ;;  %v444_v28 = vld [vmem:[%s3505_s4] sm:$0xff]  ;;  %v445_v29 = vld [vmem:[%s3505_s4 + $0x8] sm:$0xff] }
  0x2e   :  { %2450 = vmatprep.subr.bf16.mxu0 %v2449_v63  ;;  %v2467_v26 = vpack.c.bf16 %v135_v25, %v134_v24  ;;  %v446_v30 = vld [vmem:[%s3505_s4 + $0x10] sm:$0xff]  ;;  %v2473_v31 = vpack.c.bf16 %v445_v29, %v444_v28  ;;  %v447_v32 = vld [vmem:[%s3505_s4 + $0x18] sm:$0xff]  ;;  %v1975_v35 = vld [vmem:[%s3511_s10] ss:$0 sm:$0xff] }
  0x2f   :  { %v2476_v33 = vpack.c.bf16 %v447_v32, %v446_v30  ;;  %v1979_v52 = vld [vmem:[%s3505_s4 + $0x20] sm:$0xff]  ;;  %v1980_v53 = vld [vmem:[%s3505_s4 + $0x28] sm:$0xff]  ;;  %v1981_v54 = vld [vmem:[%s3505_s4 + $0x30] sm:$0xff] }
  0x30   :  { %2474 = vmatpush3.bf16.msra.mxu1 %v2473_v31  ;;  %v2479_v55 = vpack.c.bf16 %v1980_v53, %v1979_v52  ;;  %v1982_v56 = vld [vmem:[%s3505_s4 + $0x38] sm:$0xff]  ;;  %v1977_v58 = vld [vmem:[%s3511_s10 + $0x1] ss:$0 sm:$0xff]  ;;  %v1986_v1 = vld [vmem:[%s3505_s4 + $0x48] sm:$0xff] }
  0x31   :  { %2452 = vmatpush3.bf16.msra.mxu0 %v2451_v4  ;;  %2475 = vmatprep.subr.bf16.mxu1 %v2708_v50  ;;  %v2482_v57 = vpack.c.bf16 %v1982_v56, %v1981_v54  ;;  %v1985_v0 = vld [vmem:[%s3505_s4 + $0x40] sm:$0xff]  ;;  %v1987_v2 = vld [vmem:[%s3505_s4 + $0x50] sm:$0xff]  ;;  %v1988_v4 = vld [vmem:[%s3505_s4 + $0x58] sm:$0xff] }
  0x32   :  { %2454 = vmatprep.subr.bf16.mxu0 %v2453_v5  ;;  %v2485_v3 = vpack.c.bf16 %v1986_v1, %v1985_v0  ;;  %v2488_v5 = vpack.c.bf16 %v1988_v4, %v1987_v2  ;;  %v1983_v6 = vld [vmem:[%s3511_s10 + $0x2] ss:$0 sm:$0xff]  ;;  %v1992_v12 = vld [vmem:[%s3505_s4 + $0x68] sm:$0xff]  ;;  %v1993_v13 = vld [vmem:[%s3505_s4 + $0x70] sm:$0xff] }
  0x33   :  { %v1994_v15 = vld [vmem:[%s3505_s4 + $0x78] sm:$0xff]  ;;  %v863_v24 = vld [vmem:[%s3507_s6] sm:$0xff]  ;;  %v865_v30 = vld [vmem:[%s3507_s6 + $0x10] sm:$0xff] }
  0x34   :  { %2477 = vmatpush3.bf16.msra.mxu1 %v2476_v33  ;;  %v783_v28 = vld [vmem:[%s3506_s5 + $0x18] sm:$0xff]  ;;  %vm2510_vm5 = vmpackc.low %vm963_vm3, %vm2711_vm4  ;;  %v1997_v53 = vld [vmem:[%s3512_s11] ss:$0 sm:$0xff] }
  0x35   :  { %2456 = vmatpush3.bf16.msra.mxu0 %v2455_v10  ;;  %2478 = vmatprep.subr.bf16.mxu1 %v2708_v50  ;;  %v866_v31 = vld [vmem:[%s3507_s6 + $0x18] sm:$0xff]  ;;  %v1999_v54 = vld [vmem:[%s3512_s11 + $0x1] ss:$0 sm:$0xff] }
  0x36   :  { %2458 = vmatprep.subr.bf16.mxu0 %v2457_v11  ;;  %v1991_v11 = vld [vmem:[%s3505_s4 + $0x60] sm:$0xff]  ;;  %v2506_v33 = vpack.c.bf16 %v866_v31, %v865_v30 }
  0x37   :  { %v2491_v14 = vpack.c.bf16 %v1992_v12, %v1991_v11  ;;  %v2011_v11 = vld [vmem:[%s3505_s4 + $0xa0] sm:$0xff]  ;;  %v2012_v12 = vld [vmem:[%s3505_s4 + $0xa8] sm:$0xff] }
  0x38   :  { %v2015_v31 = vld [vmem:[%s3511_s10 + $0x7] ss:$0 sm:$0xff] }
  0x39   :  { %2460 = vmatpush3.bf16.msra.mxu0 %v2459_v16  ;;  %v2494_v16 = vpack.c.bf16 %v1994_v15, %v1993_v13  ;;  %v2013_v13 = vld [vmem:[%s3505_s4 + $0xb0] sm:$0xff]  ;;  %v2014_v15 = vld [vmem:[%s3505_s4 + $0xb8] sm:$0xff] }
  0x3a   :  { %2462 = vmatprep.subr.bf16.mxu0 %v2461_v17  ;;  %v1989_v17 = vld [vmem:[%s3511_s10 + $0x3] ss:$0 sm:$0xff] }
  0x3d   :  { %2464 = vmatpush3.bf16.msra.mxu0 %v2463_v22  ;;  %v780_v22 = vld [vmem:[%s3506_s5] sm:$0xff] }
  0x3e   :  { %2466 = vmatprep.subr.bf16.mxu0 %v2465_v23  ;;  %v781_v23 = vld [vmem:[%s3506_s5 + $0x8] sm:$0xff] }
  0x3f   :  { %v2497_v25 = vpack.c.bf16 %v781_v23, %v780_v22 }
  0x41   :  { %2468 = vmatpush3.bf16.msra.mxu0 %v2467_v26  ;;  %v864_v26 = vld [vmem:[%s3507_s6 + $0x8] sm:$0xff] }
  0x42   :  { %2496 = vmatprep.subr.bf16.mxu0 %v2708_v50  ;;  %v2503_v29 = vpack.c.bf16 %v864_v26, %v863_v24  ;;  %v2018_v26 = vld [vmem:[%s3505_s4 + $0xc8] sm:$0xff] }
  0x44   :  { %368 = vmatmul.mubr.f32.vlgmr.msra.gmra.mrb[2].mxu0 %v53_v27  ;;  %v782_v27 = vld [vmem:[%s3506_s5 + $0x10] sm:$0xff] }
  0x45   :  { %2279 = vmatprep.mubr.msk.f32.mxu0 %vm2709_vm0, %v2710_v60  ;;  %2498 = vmatpush3.bf16.msra.mxu0 %v2497_v25  ;;  %v2500_v32 = vpack.c.bf16 %v783_v28, %v782_v27  ;;  %v2017_v25 = vld [vmem:[%s3505_s4 + $0xc0] sm:$0xff]  ;;  %v2019_v27 = vld [vmem:[%s3505_s4 + $0xd0] sm:$0xff] }
  0x46   :  { %2499 = vmatprep.subr.bf16.mxu0 %v2708_v50  ;;  %v2528_v28 = vpack.c.bf16 %v2018_v26, %v2017_v25 }
  0x49   :  { %2501 = vmatpush3.bf16.msra.mxu0 %v2500_v32 }
  0x4a   :  { %2508 = vmatprep.subr.bf16.mxu0 %v2708_v50 }
  0xf7   :  { %v2078_v34 = vpop.f32.mrb[0].mxu0 }
  0xf8   :  { %v2079_v36 = vpop.f32.mrb[1].mxu0 }
  0xf9   :  { %v2113_v37 = vpop.f32.mrb[0].mxu1  ;;  %v2080_v38 = vadd.f32 %v2079_v36, %v2078_v34  ;;  %v1995_v34 = vld [vmem:[%s3511_s10 + $0x4] ss:$0 sm:$0xff] }
  0xfa   :  { %v2114_v39 = vpop.f32.mrb[1].mxu1 }
  0xfb   :  { %v2115_v40 = vadd.f32 %v2114_v39, %v2113_v37  ;;  %v230_v41 = vadd.f32 %v2080_v38, %v1975_v35  ;;  %v952_v38 = vld [vmem:[%s3508_s7] sm:$0xff]  ;;  %v953_v39 = vld [vmem:[%s3508_s7 + $0x8] sm:$0x3] }
  0xfd   :  { %v300_v42 = vadd.f32 %v2115_v40, %v230_v41  ;;  %v439_v43 = vpop.f32.mrb[2].mxu1  ;;  %v2509_v40 = vpack.c.bf16 %v953_v39, %v952_v38  ;;  %v2025_v38 = vld [vmem:[%s3505_s4 + $0xf0] sm:$0xff] }
  0xfe   :  { %v2226_v44 = vpop.f32.mrb[3].mxu1 }
  0xff   :  { %v2005_v44 = vld [vmem:[%s3505_s4 + $0x88] sm:$0xff] }
 0x117   :  { %v2148_v45 = vpop.f32.mrb[2].mxu0 }
 0x118   :  { %v2149_v46 = vpop.f32.mrb[3].mxu0 }
 0x119   :  { %v2150_v47 = vadd.f32 %v2149_v46, %v2148_v45  ;;  %v2006_v46 = vld [vmem:[%s3505_s4 + $0x90] sm:$0xff] }
 0x11b   :  { %v370_v48 = vadd.f32 %v2150_v47, %v300_v42  ;;  %v951_v42 = vld [vmem:[%s3502_s1] sm:$0xff]  ;;  %v2007_v47 = vld [vmem:[%s3505_s4 + $0x98] sm:$0xff] }
 0x11d   :  { %v440_v49 = vadd.f32 %v439_v43, %v370_v48  ;;  %v2004_v43 = vld [vmem:[%s3505_s4 + $0x80] sm:$0xff] }
 0x11e   :  { %v2513_v45 = vpack.c.bf16 %v2005_v44, %v2004_v43  ;;  %v1038_v48 = vld [vmem:[%s3509_s8] sm:$0xff] }
 0x11f   :  { %2582 = vtanh.f32 %v440_v49  ;;  %v1039_v49 = vld [vmem:[%s3509_s8 + $0x8] sm:$0xff] }
 0x120   :  { %v2519_v52 = vpack.c.bf16 %v1039_v49, %v1038_v48  ;;  %v2030_v48 = vld [vmem:[%s3505_s4 + $0x108] sm:$0xff]  ;;  %v2031_v49 = vld [vmem:[%s3505_s4 + $0x110] sm:$0xff] }
 0x129   :  { %v2583_v51 = vpop.eup %2582 }
 0x12a   :  { %2236 = vmatmul.mubr.msk.f32.vlgmr.msra.gmra.mrb[4].mxu1 %vm453_vm2, %v2583_v51  ;;  %v2516_v51 = vpack.c.bf16 %v2007_v47, %v2006_v46  ;;  %v2029_v47 = vld [vmem:[%s3505_s4 + $0x100] sm:$0xff] }
 0x12b   :  { %2246 = vmatprep.mubr.msk.f32.mxu1 %vm2709_vm0, %v2710_v60  ;;  %2480 = vmatpush3.bf16.msra.mxu1 %v2479_v55 }
 0x12c   :  { %2481 = vmatprep.subr.bf16.mxu1 %v2708_v50 }
 0x12f   :  { %2483 = vmatpush3.bf16.msra.mxu1 %v2482_v57 }
 0x130   :  { %2484 = vmatprep.subr.bf16.mxu1 %v2708_v50 }
 0x1fd   :  { %v523_v59 = vpop.f32.mrb[4].mxu1 }
 0x1fe   :  { %v524_v61 = vadd.f32 %v1977_v58, %v523_v59  ;;  %v2237_v62 = vpop.f32.mrb[5].mxu1 }
 0x1ff   :  { %v2001_v62 = vld [vmem:[%s3511_s10 + $0x5] ss:$0 sm:$0xff] }
 0x200   :  { %2584 = vtanh.f32 %v524_v61 }
 0x20a   :  { %v2585_v63 = vpop.eup %2584 }
 0x20b   :  { %2247 = vmatmul.mubr.msk.f32.vlgmr.msra.gmra.mrb[6].mxu1 %vm453_vm2, %v2585_v63 }
 0x20c   :  { %2257 = vmatprep.mubr.msk.f32.mxu1 %vm2709_vm0, %v2710_v60  ;;  %2486 = vmatpush3.bf16.msra.mxu1 %v2485_v3 }
 0x20d   :  { %2487 = vmatprep.subr.bf16.mxu1 %v2708_v50 }
 0x210   :  { %2489 = vmatpush3.bf16.msra.mxu1 %v2488_v5 }
 0x211   :  { %2490 = vmatprep.subr.bf16.mxu1 %v2708_v50 }
 0x2de   :  { %v607_v7 = vpop.f32.mrb[6].mxu1 }
 0x2df   :  { %v608_v8 = vadd.f32 %v1983_v6, %v607_v7  ;;  %v2248_v9 = vpop.f32.mrb[7].mxu1  ;;  %v946_v7 = vld [vmem:[%s3503_s2] sm:$0xff] }
 0x2e1   :  { %2586 = vtanh.f32 %v608_v8 }
 0x2eb   :  { %v2587_v10 = vpop.eup %2586 }
 0x2ec   :  { %2258 = vmatmul.mubr.msk.f32.vlgmr.msra.gmra.mrb[8].mxu1 %vm453_vm2, %v2587_v10 }
 0x2ed   :  { %2268 = vmatprep.mubr.msk.f32.mxu1 %vm2709_vm0, %v2710_v60  ;;  %2492 = vmatpush3.bf16.msra.mxu1 %v2491_v14  ;;  %v2522_v14 = vpack.c.bf16 %v2012_v12, %v2011_v11  ;;  %v1558_v11 = vld [vmem:[%s3510_s9 + $0xc0] sm:$0xff] }
 0x2ee   :  { %2493 = vmatprep.subr.bf16.mxu1 %v2708_v50 }
 0x2f1   :  { %2495 = vmatpush3.bf16.msra.mxu1 %v2494_v16  ;;  %v2525_v16 = vpack.c.bf16 %v2014_v15, %v2013_v13  ;;  %v1555_v15 = vld [vmem:[%s3510_s9 + $0xa8] sm:$0xff] }
 0x2f2   :  { %2502 = vmatprep.subr.bf16.mxu1 %v2708_v50 }
 0x3bf   :  { %v691_v18 = vpop.f32.mrb[8].mxu1 }
 0x3c0   :  { %v692_v19 = vadd.f32 %v1989_v17, %v691_v18  ;;  %v2259_v20 = vpop.f32.mrb[9].mxu1 }
 0x3c1   :  { %v2010_v20 = vld [vmem:[%s3511_s10 + $0x6] ss:$0 sm:$0xff] }
 0x3c2   :  { %2588 = vtanh.f32 %v692_v19 }
 0x3cc   :  { %v2589_v21 = vpop.eup %2588 }
 0x3cd   :  { %2269 = vmatmul.mubr.msk.f32.vlgmr.msra.gmra.mrb[10].mxu1 %vm453_vm2, %v2589_v21 }
 0x3ce   :  { %2290 = vmatprep.mubr.msk.f32.mxu1 %vm2709_vm0, %v2710_v60  ;;  %2504 = vmatpush3.bf16.msra.mxu1 %v2503_v29  ;;  %v2020_v29 = vld [vmem:[%s3505_s4 + $0xd8] sm:$0xff] }
 0x3cf   :  { %2505 = vmatprep.subr.bf16.mxu1 %v2708_v50  ;;  %v2531_v30 = vpack.c.bf16 %v2020_v29, %v2019_v27  ;;  %v1538_v27 = vld [vmem:[%s3510_s9 + $0x20] sm:$0xff]  ;;  %v1540_v29 = vld [vmem:[%s3510_s9 + $0x30] sm:$0xff] }
 0x3d2   :  { %2507 = vmatpush3.bf16.msra.mxu1 %v2506_v33 }
 0x3d3   :  { %2518 = vmatprep.subr.bf16.mxu1 %v2708_v50 }
 0x4a0   :  { %v775_v35 = vpop.f32.mrb[10].mxu1 }
 0x4a1   :  { %v776_v36 = vadd.f32 %v1995_v34, %v775_v35  ;;  %v2270_v37 = vpop.f32.mrb[11].mxu1 }
 0x4a2   :  { %v2024_v37 = vld [vmem:[%s3505_s4 + $0xe8] sm:$0xff] }
 0x4a3   :  { %2590 = vtanh.f32 %v776_v36  ;;  %v2023_v36 = vld [vmem:[%s3505_s4 + $0xe0] sm:$0xff] }
 0x4a4   :  { %v2534_v39 = vpack.c.bf16 %v2024_v37, %v2023_v36  ;;  %v1559_v37 = vld [vmem:[%s3510_s9 + $0xc8] sm:$0xff] }
 0x4ad   :  { %v2591_v41 = vpop.eup %2590 }
 0x4ae   :  { %2280 = vmatmul.mubr.msk.f32.vlgmr.msra.gmra.mrb[4].mxu0 %vm453_vm2, %v2591_v41  ;;  %2291 = vmatmul.mubr.msk.f32.vlgmr.msra.gmra.mrb[12].mxu1 %vm453_vm2, %v2591_v41 }
 0x4af   :  { %2511 = vmatpush3.bf16.msk.msra.mxu0 %vm2510_vm5, %v2509_v40  ;;  %2297 = vmatprep.mubr.msk.f32.mxu0 %vm2709_vm0, %v2710_v60  ;;  %v2026_v40 = vld [vmem:[%s3505_s4 + $0xf8] sm:$0xff] }
 0x4b0   :  { %2512 = vmatprep.subr.bf16.mxu0 %v2708_v50  ;;  %2315 = vmatprep.mubr.msk.f32.mxu1 %vm2709_vm0, %v2710_v60  ;;  %v2537_v41 = vpack.c.bf16 %v2026_v40, %v2025_v38  ;;  %v1554_v38 = vld [vmem:[%s3510_s9 + $0xa0] sm:$0xff] }
 0x4b1   :  { %2520 = vmatpush3.bf16.msra.mxu1 %v2519_v52  ;;  %v2032_v52 = vld [vmem:[%s3505_s4 + $0x118] sm:$0xff] }
 0x4b2   :  { %2298 = vmatmul.mubr.msk.f32.vlgmr.msra.gmra.mrb[6].mxu0 %vm959_vm6, %v951_v42  ;;  %2521 = vmatprep.subr.bf16.mxu1 %v2708_v50  ;;  %v2021_v42 = vld [vmem:[%s3511_s10 + $0x8] ss:$0 sm:$0xff] }
 0x4b3   :  { %2308 = vmatprep.mubr.msk.f32.mxu0 %vm2709_vm0, %v2710_v60  ;;  %2514 = vmatpush3.bf16.msra.mxu0 %v2513_v45 }
 0x4b4   :  { %2515 = vmatprep.subr.bf16.mxu0 %v2708_v50 }
 0x4b7   :  { %2517 = vmatpush3.bf16.msra.mxu0 %v2516_v51  ;;  %v2540_v51 = vpack.c.bf16 %v2030_v48, %v2029_v47 }
 0x4b8   :  { %2527 = vmatprep.subr.bf16.mxu0 %v2708_v50 }
 0x581   :  { %v858_v55 = vpop.f32.mrb[4].mxu0  ;;  %v938_v56 = vpop.f32.mrb[12].mxu1 }
 0x582   :  { %v859_v57 = vadd.f32 %v1997_v53, %v858_v55  ;;  %v939_v58 = vadd.f32 %v1999_v54, %v938_v56  ;;  %v2281_v59 = vpop.f32.mrb[5].mxu0  ;;  %v2292_v61 = vpop.f32.mrb[13].mxu1  ;;  %v2543_v53 = vpack.c.bf16 %v2032_v52, %v2031_v49  ;;  %v2027_v54 = vld [vmem:[%s3511_s10 + $0x9] ss:$0 sm:$0xff] }
 0x583   :  { %v1535_v59 = vld [vmem:[%s3510_s9 + $0x8] sm:$0xff]  ;;  %v1542_v61 = vld [vmem:[%s3510_s9 + $0x40] sm:$0xff] }
 0x584   :  { %2592 = vtanh.f32 %v859_v57 }
 0x585   :  { %2594 = vtanh.f32 %v939_v58  ;;  %v1033_v63 = vpop.f32.mrb[6].mxu0 }
 0x586   :  { %v1034_v0 = vadd.f32 %v2001_v62, %v1033_v63  ;;  %v2299_v1 = vpop.f32.mrb[7].mxu0  ;;  %v1537_v62 = vld [vmem:[%s3510_s9 + $0x18] sm:$0xff]  ;;  %v2545_v63 = vpack.c.bf16 %v1542_v61, %v1535_v59 }
 0x587   :  { %v1534_v1 = vld [vmem:[%s3510_s9] sm:$0xff] }
 0x588   :  { %2596 = vtanh.f32 %v1034_v0  ;;  %v1544_v0 = vld [vmem:[%s3510_s9 + $0x50] sm:$0xff] }
 0x58e   :  { %v2593_v2 = vpop.eup %2592 }
 0x58f   :  { %v2595_v3 = vpop.eup %2594  ;;  %949 = vst.msk [vmem:[#allocation4] sm:$0xff] %vm159_vm1, %v2593_v2 }
 0x590   :  { %v943_v4 = vmul.f32 0.5, %v2595_v3  ;;  %950 = vst.msk [vmem:[#allocation6] sm:$0xff] %vm159_vm1, %v2595_v3  ;;  %v2553_v3 = vpack.c.bf16 %v1544_v0, %v1537_v62 }
 0x592   :  { %v2597_v5 = vpop.eup %2596  ;;  %v944_v6 = vmul.f32 1.442695, %v943_v4 }
 0x593   :  { %2309 = vmatmul.mubr.msk.f32.vlgmr.msra.gmra.mrb[8].mxu0 %vm453_vm2, %v2597_v5  ;;  %v1536_v5 = vld [vmem:[%s3510_s9 + $0x10] sm:$0xff] }
 0x594   :  { %2598 = vpow2.f32 %v944_v6  ;;  %2337 = vmatprep.mubr.msk.f32.mxu0 %vm2709_vm0, %v2710_v60  ;;  %2529 = vmatpush3.bf16.msra.mxu0 %v2528_v28  ;;  %v1543_v6 = vld [vmem:[%s3510_s9 + $0x48] sm:$0xff]  ;;  %v1545_v28 = vld [vmem:[%s3510_s9 + $0x58] sm:$0xff] }
 0x595   :  { %2530 = vmatprep.subr.bf16.mxu0 %v2708_v50 }
 0x598   :  { %2532 = vmatpush3.bf16.msra.mxu0 %v2531_v30  ;;  %v1547_v30 = vld [vmem:[%s3510_s9 + $0x68] sm:$0xff] }
 0x599   :  { %2539 = vmatprep.subr.bf16.mxu0 %v2708_v50 }
 0x59e   :  { %v2599_v8 = vpop.eup %2598 }
 0x59f   :  { %v947_v9 = vmul.f32 %v2599_v8, %v946_v7  ;;  %v1549_v7 = vld [vmem:[%s3510_s9 + $0x78] sm:$0xff]  ;;  %v2555_v8 = vpack.c.bf16 %v1543_v6, %v1536_v5 }
 0x5a1   :  { %v948_v10 = vadd.f32 %v2593_v2, %v947_v9  ;;  %v1541_v2 = vld [vmem:[%s3510_s9 + $0x38] sm:$0xff]  ;;  %v1556_v9 = vld [vmem:[%s3510_s9 + $0xb0] sm:$0xff] }
 0x5a2   :  { %v2547_v4 = vpack.c.bf16 %v1541_v2, %v1534_v1  ;;  %v2549_v12 = vpack.c.bf16 %v1556_v9, %v1549_v7 }
 0x5a3   :  { %2316 = vmatmul.mubr.msk.f32.vlgmr.msra.gmra.mrb[14].mxu1 %vm159_vm1, %v948_v10  ;;  %v1551_v10 = vld [vmem:[%s3510_s9 + $0x88] sm:$0xff] }
 0x5a4   :  { %2326 = vmatprep.mubr.msk.f32.mxu1 %vm2709_vm0, %v2710_v60  ;;  %2523 = vmatpush3.bf16.msra.mxu1 %v2522_v14  ;;  %v2557_v13 = vpack.c.bf16 %v1558_v11, %v1551_v10  ;;  %v1548_v14 = vld [vmem:[%s3510_s9 + $0x70] sm:$0xff] }
 0x5a5   :  { %2524 = vmatprep.subr.bf16.mxu1 %v2708_v50 }
 0x5a8   :  { %2526 = vmatpush3.bf16.msra.mxu1 %v2525_v16  ;;  %v1550_v16 = vld [vmem:[%s3510_s9 + $0x80] sm:$0xff] }
 0x5a9   :  { %2533 = vmatprep.subr.bf16.mxu1 %v2708_v50 }
 0x666   :  { %v1114_v17 = vpop.f32.mrb[8].mxu0 }
 0x667   :  { %v2310_v18 = vpop.f32.mrb[9].mxu0 }
 0x668   :  { %v1557_v18 = vld [vmem:[%s3510_s9 + $0xb8] sm:$0xff] }
 0x676   :  { %v1187_v19 = vpop.f32.mrb[14].mxu1 }
 0x677   :  { %v1188_v21 = vadd.f32 %v1187_v19, %v1114_v17  ;;  %v2317_v22 = vpop.f32.mrb[15].mxu1  ;;  %v2551_v17 = vpack.c.bf16 %v1555_v15, %v1548_v14  ;;  %v1539_v19 = vld [vmem:[%s3510_s9 + $0x28] sm:$0xff] }
 0x679   :  { %v1196_v23 = vadd.f32 %v2010_v20, %v1188_v21  ;;  %v1546_v20 = vld [vmem:[%s3510_s9 + $0x60] sm:$0xff]  ;;  %v2559_v21 = vpack.c.bf16 %v1557_v18, %v1550_v16 }
 0x67a   :  { %v2561_v22 = vpack.c.bf16 %v1546_v20, %v1539_v19 }
 0x67b   :  { %2600 = vtanh.f32 %v1196_v23  ;;  %v2033_v23 = vld [vmem:[%s3511_s10 + $0xa] ss:$0 sm:$0xff] }
 0x685   :  { %v2601_v24 = vpop.eup %2600 }
 0x686   :  { %2327 = vmatmul.mubr.msk.f32.vlgmr.msra.gmra.mrb[16].mxu1 %vm453_vm2, %v2601_v24 }
 0x687   :  { %2348 = vmatprep.mubr.msk.f32.mxu1 %vm2709_vm0, %v2710_v60  ;;  %2535 = vmatpush3.bf16.msra.mxu1 %v2534_v39  ;;  %v1561_v39 = vld [vmem:[%s3510_s9 + $0xd8] sm:$0xff] }
 0x688   :  { %2536 = vmatprep.subr.bf16.mxu1 %v2708_v50 }
 0x68b   :  { %2538 = vmatpush3.bf16.msra.mxu1 %v2537_v41 }
 0x68c   :  { %2546 = vmatprep.subr.bf16.mxu1 %v2545_v63 }
 0x759   :  { %v1277_v32 = vpop.f32.mrb[16].mxu1 }
 0x75a   :  { %v1278_v33 = vadd.f32 %v2015_v31, %v1277_v32  ;;  %v2328_v34 = vpop.f32.mrb[17].mxu1  ;;  %v1553_v31 = vld [vmem:[%s3510_s9 + $0x98] sm:$0xff]  ;;  %v1560_v32 = vld [vmem:[%s3510_s9 + $0xd0] sm:$0xff] }
 0x75b   :  { %v2570_v34 = vpack.c.bf16 %v1547_v30, %v1540_v29  ;;  %v2565_v36 = vpack.c.bf16 %v1560_v32, %v1553_v31 }
 0x75c   :  { %2602 = vtanh.f32 %v1278_v33  ;;  %v2563_v33 = vpack.c.bf16 %v1545_v28, %v1538_v27 }
 0x766   :  { %v2603_v35 = vpop.eup %2602 }
 0x767   :  { %2338 = vmatmul.mubr.msk.f32.vlgmr.msra.gmra.mrb[10].mxu0 %vm453_vm2, %v2603_v35  ;;  %v1552_v35 = vld [vmem:[%s3510_s9 + $0x90] sm:$0xff]  ;;  %s2712_s9 = smov [#allocation4]  }
 0x768   :  { %2359 = vmatprep.mubr.msk.f32.mxu0 %vm2709_vm0, %v2710_v60  ;;  %2541 = vmatpush3.bf16.msra.mxu0 %v2540_v51  ;;  %v2567_v41 = vpack.c.bf16 %v1559_v37, %v1552_v35  ;;  %s1950_s11 = sshll.u32 %s2712_s9, 4  ;;  %s1951_s11 = int_to_ptr.vmem [resolvable:$true] %s1950_s11 }
 0x769   :  { %2542 = vmatprep.subr.bf16.mxu0 %v2708_v50  ;;  %s2638_s23 = scalar_lea.vmem %s1951_s11, 128  ;;  %p2643_p1 = scmp.lt.s32.totalorder %s1951_s11, %s1951_s11 }
 0x76a   :  { %p2639_p0 = scmp.ne.s32.totalorder %s1951_s11, %s2638_s23  ;;  %p2644_p2 = scmp.lt.s32.totalorder %s2638_s23, %s2638_s23 }
 0x76c   :  { %2544 = vmatpush3.bf16.msra.mxu0 %v2543_v53  ;;  %p2645_p3 = por %p2644_p2, %p2643_p1 }
 0x76d   :  { %2554 = vmatprep.subr.bf16.mxu0 %v2553_v3 }
 0x76e   :  { %p2646_p4 = pnand %p2645_p3, %p2639_p0 }
 0x83a   :  { %v1361_v43 = vpop.f32.mrb[10].mxu0 }
 0x83b   :  { %v1362_v44 = vadd.f32 %v2021_v42, %v1361_v43  ;;  %v2339_v45 = vpop.f32.mrb[11].mxu0  ;;  %v2573_v42 = vpack.c.bf16 %v1561_v39, %v1554_v38 }
 0x83d   :  { %2604 = vtanh.f32 %v1362_v44 }
 0x847   :  { %v2605_v46 = vpop.eup %2604 }
 0x848   :  { %2349 = vmatmul.mubr.msk.f32.vlgmr.msra.gmra.mrb[18].mxu1 %vm453_vm2, %v2605_v46 }
 0x849   :  { %1666 = vmatprep.mubr.f32.mxu1 %v2710_v60  ;;  %2548 = vmatpush1.bf16.msra.mxu1 %v2547_v4 }
 0x84a   :  { %2550 = vmatprep.subr.bf16.mxu1 %v2549_v12 }
 0x84d   :  { %2552 = vmatpush1.bf16.msra.mxu1 %v2551_v17 }
 0x84e   :  { %2562 = vmatprep.subr.bf16.mxu1 %v2561_v22 }
 0x91b   :  { %v1445_v55 = vpop.f32.mrb[18].mxu1 }
 0x91c   :  { %v1446_v56 = vadd.f32 %v2027_v54, %v1445_v55  ;;  %v2350_v57 = vpop.f32.mrb[19].mxu1 }
 0x91e   :  { %2606 = vtanh.f32 %v1446_v56 }
 0x928   :  { %v2607_v58 = vpop.eup %2606 }
 0x929   :  { %2360 = vmatmul.mubr.msk.f32.vlgmr.msra.gmra.mrb[12].mxu0 %vm453_vm2, %v2607_v58 }
 0x92a   :  { %1737 = vmatprep.mubr.f32.mxu0 %v2710_v60  ;;  %2556 = vmatpush1.bf16.msra.mxu0 %v2555_v8 }
 0x92b   :  { %2558 = vmatprep.subr.bf16.mxu0 %v2557_v13 }
 0x92e   :  { %2560 = vmatpush1.bf16.msra.mxu0 %v2559_v21 }
 0x92f   :  { %2569 = vmatprep.subr.bf16.mxu0 %v2708_v50 }
 0x9fc   :  { %v1529_v24 = vpop.f32.mrb[12].mxu0 }
 0x9fd   :  { %v1530_v25 = vadd.f32 %v2033_v23, %v1529_v24  ;;  %v2361_v26 = vpop.f32.mrb[13].mxu0 }
 0x9ff   :  { %2608 = vtanh.f32 %v1530_v25 }
 0xa09   :  { %v2609_v40 = vpop.eup %2608 }
 0xa0a   :  { %2035 = vmatmul.mubr.msk.f32.vlgmr.msra.gmra.mrb[20].mxu1 %vm453_vm2, %v2609_v40  ;;  %2036 = vmatmul.mubr.msk.f32.vlgmr.msra.gmra.mrb[14].mxu0 %vm453_vm2, %v2609_v40 }
 0xa0b   :  { %2564 = vmatpush1.bf16.msra.mxu1 %v2563_v33  ;;  %2571 = vmatpush3.bf16.msra.mxu0 %v2570_v34 }
 0xa0c   :  { %2566 = vmatprep.subr.bf16.mxu1 %v2565_v36  ;;  %2572 = vmatprep.subr.bf16.mxu0 %v2708_v50 }
 0xa0d   :  { %1808 = vmatprep.mubr.f32.mxu1 %v2710_v60  ;;  %2370 = vmatprep.mubr.msk.f32.mxu0 %vm2709_vm0, %v2710_v60 }
 0xa0f   :  { %2568 = vmatpush1.bf16.msra.mxu1 %v2567_v41  ;;  %2574 = vmatpush3.bf16.msra.mxu0 %v2573_v42 }
 0xa12   :  { %2037 = vmatmul.mubr.msk.f32.vlgmr.msra.gmra.mrb[22].mxu1 %vm453_vm2, %v2609_v40  ;;  %2371 = vmatmul.mubr.msk.f32.vlgmr.msra.gmra.mrb[16].mxu0 %vm453_vm2, %v2609_v40 }
 0xa13   :  { %2649 = shalt.err (!%p2646_p4)
}
 0xa14   :  { %s2650_s26 = scalar_lea.hbm %s3515_s14, 128 }
 0xa15   :  { %p2651_p5 = scmp.ne.s32.totalorder %s3515_s14, %s2650_s26  ;;  %p2654_p6 = scmp.lt.u32.totalorder %s2650_s26, %s3515_s14 }
 0xa17   :  { %p2656_p7 = pnand %p2654_p6, %p2651_p5 }
 0xa19   :  { %2659 = shalt.err (!%p2656_p7)
}
 0xa1a   :  { %1953 = dma.vmem_to_hbm [thread:$0]  %s1951_s11, 128, %s3515_s14, [#allocation5]  }
 0xa1b   :  { %s2713_s30 = smov [#allocation6]  }
 0xa1c   :  { %s1960_s16 = sshll.u32 %s2713_s30, 4  ;;  %s1961_s16 = int_to_ptr.vmem [resolvable:$true] %s1960_s16 }
 0xa1d   :  { %s2660_s17 = scalar_lea.vmem %s1961_s16, 128  ;;  %p2665_p9 = scmp.lt.s32.totalorder %s1961_s16, %s1961_s16 }
 0xa1e   :  { %p2661_p8 = scmp.ne.s32.totalorder %s1961_s16, %s2660_s17  ;;  %p2666_p10 = scmp.lt.s32.totalorder %s2660_s17, %s2660_s17 }
 0xa20   :  { %p2667_p11 = por %p2666_p10, %p2665_p9 }
 0xa22   :  { %p2668_p12 = pnand %p2667_p11, %p2661_p8 }
 0xa24   :  { %2671 = shalt.err (!%p2668_p12)
}
 0xa25   :  { %s2672_s19 = scalar_lea.hbm %s3516_s15, 128 }
 0xa26   :  { %p2673_p13 = scmp.ne.s32.totalorder %s3516_s15, %s2672_s19  ;;  %p2676_p0 = scmp.lt.u32.totalorder %s2672_s19, %s3516_s15 }
 0xa28   :  { %p2678_p1 = pnand %p2676_p0, %p2673_p13 }
 0xa2a   :  { %2681 = shalt.err (!%p2678_p1)
}
 0xa2b   :  { %1963 = dma.vmem_to_hbm [thread:$0]  %s1961_s16, 128, %s3516_s15, [#allocation5]   ;;  %v1564_v50 = vlaneseq  ;;  %v1562_v45 = vld [vmem:[%s3513_s12] sm:$0xff] }
 0xa2c   :  { %s2714_s12 = smov [#allocation2]  }
 0xa2d   :  { %v1565_v60 = vshrl.u32 %v1564_v50, 7  ;;  %s1940_s15 = sshll.u32 %s2714_s12, 4  ;;  %s1941_s15 = int_to_ptr.vmem [resolvable:$true] %s1940_s15 }
 0xa2e   :  { %s2682_s8 = scalar_lea.vmem %s1941_s15, 896  ;;  %p2687_p3 = scmp.lt.s32.totalorder %s1941_s15, %s1941_s15 }
 0xa2f   :  { %v1566_v43 = vsub.s32 0, %v1565_v60  ;;  %v1574_v44 = vsub.s32 2, %v1565_v60  ;;  %v1570_v46 = vsub.s32 1, %v1565_v60  ;;  %v1578_v47 = vsub.s32 3, %v1565_v60  ;;  %p2683_p2 = scmp.ne.s32.totalorder %s1941_s15, %s2682_s8  ;;  %p2688_p4 = scmp.lt.s32.totalorder %s2682_s8, %s2682_s8 }
 0xa30   :  { %v1582_v59 = vsub.s32 4, %v1565_v60  ;;  %v1590_v61 = vsub.s32 6, %v1565_v60  ;;  %v1586_v0 = vsub.s32 5, %v1565_v60 }
 0xa31   :  { %v1567_v48 = vrot.slane %v1562_v45, %v1566_v43  ;;  %v1575_v49 = vrot.slane %v1562_v45, %v1574_v44  ;;  %v1571_v51 = vrot.slane %v1562_v45, %v1570_v46  ;;  %v1579_v52 = vrot.slane %v1562_v45, %v1578_v47  ;;  %p2689_p5 = por %p2688_p4, %p2687_p3 }
 0xa32   :  { %v1583_v5 = vrot.slane %v1562_v45, %v1582_v59  ;;  %v1591_v6 = vrot.slane %v1562_v45, %v1590_v61  ;;  %v1587_v7 = vrot.slane %v1562_v45, %v1586_v0 }
 0xa33   :  { %p2690_p6 = pnand %p2689_p5, %p2683_p2 }
 0xadd   :  { %v1668_v53 = vpop.f32.mrb[20].mxu1  ;;  %v1739_v54 = vpop.f32.mrb[14].mxu0 }
 0xade   :  { %v1669_v55 = vadd.f32 %v1668_v53, %v1567_v48  ;;  %v1740_v56 = vadd.f32 %v1739_v54, %v1575_v49  ;;  %v1670_v57 = vpop.f32.mrb[21].mxu1  ;;  %v1741_v58 = vpop.f32.mrb[15].mxu0 }
 0xadf   :  { %v1671_v62 = vadd.f32 %v1670_v57, %v1571_v51  ;;  %v1742_v63 = vadd.f32 %v1741_v58, %v1579_v52 }
 0xae0   :  { %v2039_v1 = vmul.f32 -1.442695, %v1669_v55  ;;  %v2041_v2 = vmul.f32 -1.442695, %v1740_v56 }
 0xae1   :  { %v2040_v3 = vmul.f32 -1.442695, %v1671_v62  ;;  %v2042_v4 = vmul.f32 -1.442695, %v1742_v63 }
 0xae2   :  { %2610 = vpow2.f32 %v2039_v1 }
 0xae3   :  { %2612 = vpow2.f32 %v2041_v2 }
 0xae4   :  { %2614 = vpow2.f32 %v2040_v3 }
 0xae5   :  { %2616 = vpow2.f32 %v2042_v4  ;;  %v1810_v8 = vpop.f32.mrb[22].mxu1  ;;  %v1881_v9 = vpop.f32.mrb[16].mxu0 }
 0xae6   :  { %v1811_v10 = vadd.f32 %v1810_v8, %v1583_v5  ;;  %v1882_v11 = vadd.f32 %v1881_v9, %v1591_v6  ;;  %v1812_v12 = vpop.f32.mrb[23].mxu1  ;;  %v2372_v13 = vpop.f32.mrb[17].mxu0 }
 0xae7   :  { %v1813_v14 = vadd.f32 %v1812_v12, %v1587_v7 }
 0xae8   :  { %v2043_v15 = vmul.f32 -1.442695, %v1811_v10  ;;  %v2045_v16 = vmul.f32 -1.442695, %v1882_v11 }
 0xae9   :  { %v2044_v17 = vmul.f32 -1.442695, %v1813_v14 }
 0xaea   :  { %2618 = vpow2.f32 %v2043_v15 }
 0xaeb   :  { %2620 = vpow2.f32 %v2045_v16 }
 0xaec   :  { %v2611_v18 = vpop.eup %2610  ;;  %2622 = vpow2.f32 %v2044_v17 }
 0xaed   :  { %v2613_v19 = vpop.eup %2612  ;;  %v1906_v20 = vadd.f32 1.0, %v2611_v18 }
 0xaee   :  { %v2615_v21 = vpop.eup %2614  ;;  %v1908_v22 = vadd.f32 1.0, %v2613_v19 }
 0xaef   :  { %v2617_v23 = vpop.eup %2616  ;;  %2624 = vrcp.f32 %v1906_v20  ;;  %v1907_v24 = vadd.f32 1.0, %v2615_v21 }
 0xaf0   :  { %2626 = vrcp.f32 %v1908_v22  ;;  %v1909_v25 = vadd.f32 1.0, %v2617_v23 }
 0xaf1   :  { %2628 = vrcp.f32 %v1907_v24 }
 0xaf2   :  { %2630 = vrcp.f32 %v1909_v25 }
 0xaf4   :  { %v2619_v26 = vpop.eup %2618 }
 0xaf5   :  { %v2621_v27 = vpop.eup %2620  ;;  %v1910_v28 = vadd.f32 1.0, %v2619_v26 }
 0xaf6   :  { %v2623_v29 = vpop.eup %2622  ;;  %v1912_v30 = vadd.f32 1.0, %v2621_v27 }
 0xaf7   :  { %2632 = vrcp.f32 %v1910_v28  ;;  %v1911_v31 = vadd.f32 1.0, %v2623_v29 }
 0xaf8   :  { %2634 = vrcp.f32 %v1912_v30 }
 0xaf9   :  { %v2625_v32 = vpop.eup %2624  ;;  %2636 = vrcp.f32 %v1911_v31 }
 0xafa   :  { %v2627_v33 = vpop.eup %2626  ;;  %1927 = vst [vmem:[#allocation2] sm:$0xff] %v2625_v32 }
 0xafb   :  { %v2629_v34 = vpop.eup %2628  ;;  %1929 = vst [vmem:[#allocation2 + $0x10] sm:$0xff] %v2627_v33 }
 0xafc   :  { %v2631_v35 = vpop.eup %2630  ;;  %1928 = vst [vmem:[#allocation2 + $0x8] sm:$0xff] %v2629_v34 }
 0xafd   :  { %1930 = vst [vmem:[#allocation2 + $0x18] sm:$0xff] %v2631_v35 }
 0xb01   :  { %v2633_v36 = vpop.eup %2632 }
 0xb02   :  { %v2635_v37 = vpop.eup %2634  ;;  %1931 = vst [vmem:[#allocation2 + $0x20] sm:$0xff] %v2633_v36 }
 0xb03   :  { %v2637_v38 = vpop.eup %2636  ;;  %1933 = vst [vmem:[#allocation2 + $0x30] sm:$0xff] %v2635_v37 }
 0xb04   :  { %1932 = vst [vmem:[#allocation2 + $0x28] sm:$0xff] %v2637_v38 }
 0xb05   :  { %2693 = shalt.err (!%p2690_p6)
}
 0xb06   :  { %s2694_s11 = scalar_lea.hbm %s3514_s13, 896 }
 0xb07   :  { %p2695_p7 = scmp.ne.s32.totalorder %s3514_s13, %s2694_s11  ;;  %p2698_p8 = scmp.lt.u32.totalorder %s2694_s11, %s3514_s13 }
 0xb09   :  { %p2700_p9 = pnand %p2698_p8, %p2695_p7 }
 0xb0b   :  { %2703 = shalt.err (!%p2700_p9)
}
 0xb0c   :  { %1943 = dma.vmem_to_hbm [thread:$0]  %s1941_s15, 896, %s3514_s13, [#allocation3]  }
 0xb0d   :  { %2704 = dma.done.wait [#allocation3], 896  }
 0xb0e   :  { %2705 = vsyncadd [#allocation3], 4294966400 }
 0xb0f   :  { %2706 = dma.done.wait [#allocation5], 256  }
 0xb10   :  { %2707 = vsyncadd [#allocation5], 4294967040 }
 0xb11   :  { %1973 = vsyncpa [#allocation3], 1 }
 0xb12   :  { %1974 = vsyncpa [#allocation5], 1 }

</bundles_post_ra>
